<compile_context>
chip_gen: v6e
topology: v6e:2x2x1
jax: 0.10.0
libtpu: 0.0.40
codegen_flags: <defaults>
</compile_context>

<pallas_src>
import functools

import jax
import jax.numpy as jnp
from jax.experimental import pallas as pl
from jax.experimental.pallas import tpu as pltpu

_LANE = 128
_SUB = 8


def _loss_stats_kernel(x_ref, t_ref, inter_ref, psum_ref, tsum_ref, ce_ref, *,
                       num_classes, masked):
    # x_ref : (1, C, S, 128) logits block (pixels fill sublanes+lanes, C leading)
    # t_ref : (1, 1, S, 128) int32 class indices (-1 marks padded pixels)
    # outputs: (1, C, 1) per-(batch,class) accumulators, VMEM-resident across the
    #          pixel-tile axis and written back to HBM once per batch element.
    p = pl.program_id(1)

    @pl.when(p == 0)
    def _init():
        inter_ref[...] = jnp.zeros_like(inter_ref)
        psum_ref[...] = jnp.zeros_like(psum_ref)
        tsum_ref[...] = jnp.zeros_like(tsum_ref)
        ce_ref[...] = jnp.zeros_like(ce_ref)

    x = x_ref[0].astype(jnp.float32)     # (C, S, 128); upcast after DMA (bf16 path)
    tgt = t_ref[0]                       # (1, S, 128) int32

    # one-hot targets built in-kernel: per-class compare against the raw indices
    onehot = jnp.concatenate(
        [(tgt == c).astype(jnp.float32) for c in range(num_classes)], axis=0)   # (C,S,128)

    # numerically-stable softmax / log-softmax over the class (leading) axis:
    # pure elementwise VALU ops across C slabs, no cross-lane/sublane shuffles.
    m = jnp.max(x, axis=0, keepdims=True)                     # (1, S, 128)
    shifted = x - m
    ex = jnp.exp(shifted)
    denom = jnp.sum(ex, axis=0, keepdims=True)                # (1, S, 128)
    probs = ex * pl.reciprocal(denom, approx=True)            # (C, S, 128)
    log_probs = shifted - jnp.log(denom)                      # (C, S, 128)

    if masked:
        # padded pixels carry target == -1: onehot is already zero there, only
        # the plain probs sum needs explicit masking.
        probs = probs * (tgt >= 0).astype(jnp.float32)

    def _csum(v):
        # (C, S, 128) -> (C, 1): per-class full pixel reduce
        return jnp.sum(jnp.sum(v, axis=2), axis=1, keepdims=True)

    inter_ref[0] += _csum(probs * onehot)
    psum_ref[0] += _csum(probs)
    tsum_ref[0] += _csum(onehot)
    ce_ref[0] += _csum(onehot * (-log_probs))


def _plan_tiles(p, bytes_per_px, vmem_cap):
    """Pick pixel padding + sublane tile so blocks are big, legal and fit VMEM.

    Returns (p_pad, s_tile) with p_pad % 128 == 0, s_tile dividing p_pad // 128,
    and s_tile either a multiple of 8 or equal to the full sublane extent.
    """
    budget = vmem_cap // 6                          # input-pipeline budget
    cap = budget // (2 * bytes_per_px * _LANE)      # double-buffered input blocks
    cap = max(_SUB, min(int(cap), 1024))

    p128 = -(-p // _LANE) * _LANE
    s_tot = p128 // _LANE
    if s_tot <= cap:
        return p128, s_tot                          # single tile == full extent

    step = _LANE * _SUB                             # pad so sublane count % 8 == 0
    p_pad = -(-p // step) * step
    s_tot = p_pad // _LANE
    s_tile = (cap // _SUB) * _SUB
    while s_tot % s_tile != 0:
        s_tile -= _SUB
    return p_pad, s_tile


def combined_loss(logits, targets, smooth=1e-6, ce_weight=1.0, dice_weight=1.0):
    """logits: (B, C, H, W) float, targets: (B, H, W) int class indices."""
    B, C, H, W = logits.shape
    P = H * W

    # pure reshape of the NCHW layout (no transpose pass); keep bf16 as bf16
    x = logits.reshape(B, C, P)
    if x.dtype not in (jnp.float32, jnp.bfloat16):
        x = x.astype(jnp.float32)
    t = targets.reshape(B, 1, P).astype(jnp.int32)

    try:
        vmem_cap = int(pltpu.get_tpu_info().vmem_capacity_bytes)
    except Exception:  # pragma: no cover - conservative fallback (v7x per-core VMEM)
        vmem_cap = 64 * 1024 * 1024

    bytes_per_px = C * x.dtype.itemsize + 4     # logits + int32 targets
    p_pad, s_tile = _plan_tiles(P, bytes_per_px, vmem_cap)

    if p_pad != P:
        x = jnp.pad(x, ((0, 0), (0, 0), (0, p_pad - P)))
        t = jnp.pad(t, ((0, 0), (0, 0), (0, p_pad - P)), constant_values=-1)

    s_tot = p_pad // _LANE
    num_s = s_tot // s_tile

    # free row-major split of the pixel axis: pixels now fill full (8,128) vregs
    x = x.reshape(B, C, s_tot, _LANE)
    t = t.reshape(B, 1, s_tot, _LANE)

    kernel = functools.partial(_loss_stats_kernel, num_classes=C,
                               masked=(p_pad != P))

    stat_shape = jax.ShapeDtypeStruct((B, C, 1), jnp.float32)
    stat_spec = pl.BlockSpec((1, C, 1), lambda b, s: (b, 0, 0))

    grid_spec = pltpu.PrefetchScalarGridSpec(
        num_scalar_prefetch=0,
        grid=(B, num_s),
        in_specs=[
            pl.BlockSpec((1, C, s_tile, _LANE), lambda b, s: (b, 0, s, 0)),
            pl.BlockSpec((1, 1, s_tile, _LANE), lambda b, s: (b, 0, s, 0)),
        ],
        out_specs=[stat_spec, stat_spec, stat_spec, stat_spec],
    )

    block_bytes = s_tile * _LANE * bytes_per_px
    vmem_limit = int(min(vmem_cap, max(32 << 20, 6 * block_bytes + (8 << 20))))

    cost = pl.CostEstimate(
        flops=int(12 * B * p_pad * C),
        transcendentals=int(B * p_pad * (C + 2)),
        bytes_accessed=int(x.size * x.dtype.itemsize + t.size * 4 + 4 * B * C * 4),
    )

    inter, psum, tsum, ce = pl.pallas_call(
        kernel,
        out_shape=(stat_shape, stat_shape, stat_shape, stat_shape),
        grid_spec=grid_spec,
        compiler_params=pltpu.CompilerParams(
            dimension_semantics=("parallel", "arbitrary"),
            vmem_limit_bytes=vmem_limit,
        ),
        cost_estimate=cost,
    )(x, t)

    inter = inter[:, :, 0]   # (B, C)
    psum = psum[:, :, 0]
    tsum = tsum[:, :, 0]

    # nn.CrossEntropyLoss(): mean over all B*H*W (real) pixels
    ce_loss = jnp.sum(ce) / (B * P)

    # DiceLoss: per-batch, per-class dice; sum over classes / C; 1 - mean over batch
    dice_bc = (2.0 * inter + smooth) / (psum + tsum + smooth)
    dice = jnp.mean(jnp.sum(dice_bc, axis=1) / C)
    dice_loss = 1.0 - dice

    return ce_weight * ce_loss + dice_weight * dice_loss


def _reference_loss(logits, targets, smooth=1e-6, ce_weight=1.0, dice_weight=1.0):
    """Pure-JAX reference mirroring the PyTorch module, for verification."""
    B, C, H, W = logits.shape
    logits = logits.astype(jnp.float32)
    onehot = jax.nn.one_hot(targets, C, dtype=jnp.float32)          # (B,H,W,C)
    onehot = jnp.transpose(onehot, (0, 3, 1, 2))                    # (B,C,H,W)

    log_probs = jax.nn.log_softmax(logits, axis=1)
    ce = -jnp.mean(jnp.sum(onehot * log_probs, axis=1))

    probs = jax.nn.softmax(logits, axis=1).reshape(B, C, -1)
    tt = onehot.reshape(B, C, -1)
    inter = jnp.sum(probs * tt, axis=2)
    dice_bc = (2.0 * inter + smooth) / (jnp.sum(probs, axis=2) + jnp.sum(tt, axis=2) + smooth)
    dice = jnp.mean(jnp.sum(dice_bc, axis=1) / C)
    return ce_weight * ce + dice_weight * (1.0 - dice)


if __name__ == "__main__":
    key = jax.random.PRNGKey(0)
    k1, k2, k3, k4 = jax.random.split(key, 4)

    # main test: lane-aligned pixel count
    B, C, H, W = 2, 4, 16, 16
    logits = jax.random.normal(k1, (B, C, H, W), dtype=jnp.float32)
    targets = jax.random.randint(k2, (B, H, W), 0, C, dtype=jnp.int32)

    loss = jax.block_until_ready(combined_loss(logits, targets))
    ref = _reference_loss(logits, targets)
    assert jnp.allclose(loss, ref, rtol=2e-3, atol=2e-3), (loss, ref)

    # second test: non-lane-aligned spatial size exercises the padded/masked path
    H2, W2 = 10, 10
    logits2 = jax.random.normal(k3, (B, C, H2, W2), dtype=jnp.float32)
    targets2 = jax.random.randint(k4, (B, H2, W2), 0, C, dtype=jnp.int32)

    loss2 = jax.block_until_ready(combined_loss(logits2, targets2))
    ref2 = _reference_loss(logits2, targets2)
    assert jnp.allclose(loss2, ref2, rtol=2e-3, atol=2e-3), (loss2, ref2)

    print("KERNEL_OK")
</pallas_src>

<mosaic_0001>
module attributes {stable_mosaic.version = 11 : i64} {
  func.func @_loss_stats_kernel(%arg0: i32, %arg1: i32, %arg2: memref<1x4x2x128xf32, #tpu.memory_space<vmem>>, %arg3: memref<1x1x2x128xi32, #tpu.memory_space<vmem>>, %arg4: memref<1x4x1xf32, #tpu.memory_space<vmem>>, %arg5: memref<1x4x1xf32, #tpu.memory_space<vmem>>, %arg6: memref<1x4x1xf32, #tpu.memory_space<vmem>>, %arg7: memref<1x4x1xf32, #tpu.memory_space<vmem>>) attributes {dimension_semantics = [#tpu.dimension_semantics<parallel>, #tpu.dimension_semantics<arbitrary>], iteration_bounds = array<i64: 2, 1>, scalar_prefetch = 0 : i64, scratch_operands = 0 : i64, tpu.core_type = #tpu.core_type<tc>, window_params = [{transform_indices = @transform_0, window_bounds = array<i64: 1, 4, 2, 128>}, {transform_indices = @transform_1, window_bounds = array<i64: 1, 1, 2, 128>}, {transform_indices = @transform_2, window_bounds = array<i64: 1, 4, 1>}, {transform_indices = @transform_3, window_bounds = array<i64: 1, 4, 1>}, {transform_indices = @transform_4, window_bounds = array<i64: 1, 4, 1>}, {transform_indices = @transform_5, window_bounds = array<i64: 1, 4, 1>}]} {
    %c0_i32 = arith.constant 0 : i32
    %0 = arith.cmpi eq, %arg1, %c0_i32 : i32
    %1 = arith.extui %0 : i1 to i32
    %c0_i32_0 = arith.constant 0 : i32
    %2 = arith.cmpi ne, %1, %c0_i32_0 : i32
    scf.if %2 {
      %cst_43 = arith.constant 0.000000e+00 : f32
      %77 = vector.broadcast %cst_43 : f32 to vector<1x4x1xf32>
      %c0_44 = arith.constant 0 : index
      %c0_45 = arith.constant 0 : index
      %c0_46 = arith.constant 0 : index
      %78 = vector.load %arg4[%c0_44, %c0_45, %c0_46] : memref<1x4x1xf32, #tpu.memory_space<vmem>>, vector<1x4x1xf32>
      tpu.vector_store %arg4[%c0_44, %c0_45, %c0_46], %77 {strides = array<i32>} : memref<1x4x1xf32, #tpu.memory_space<vmem>>, vector<1x4x1xf32>,
      %cst_47 = arith.constant 0.000000e+00 : f32
      %79 = vector.broadcast %cst_47 : f32 to vector<1x4x1xf32>
      %c0_48 = arith.constant 0 : index
      %c0_49 = arith.constant 0 : index
      %c0_50 = arith.constant 0 : index
      %80 = vector.load %arg5[%c0_48, %c0_49, %c0_50] : memref<1x4x1xf32, #tpu.memory_space<vmem>>, vector<1x4x1xf32>
      tpu.vector_store %arg5[%c0_48, %c0_49, %c0_50], %79 {strides = array<i32>} : memref<1x4x1xf32, #tpu.memory_space<vmem>>, vector<1x4x1xf32>,
      %cst_51 = arith.constant 0.000000e+00 : f32
      %81 = vector.broadcast %cst_51 : f32 to vector<1x4x1xf32>
      %c0_52 = arith.constant 0 : index
      %c0_53 = arith.constant 0 : index
      %c0_54 = arith.constant 0 : index
      %82 = vector.load %arg6[%c0_52, %c0_53, %c0_54] : memref<1x4x1xf32, #tpu.memory_space<vmem>>, vector<1x4x1xf32>
      tpu.vector_store %arg6[%c0_52, %c0_53, %c0_54], %81 {strides = array<i32>} : memref<1x4x1xf32, #tpu.memory_space<vmem>>, vector<1x4x1xf32>,
      %cst_55 = arith.constant 0.000000e+00 : f32
      %83 = vector.broadcast %cst_55 : f32 to vector<1x4x1xf32>
      %c0_56 = arith.constant 0 : index
      %c0_57 = arith.constant 0 : index
      %c0_58 = arith.constant 0 : index
      %84 = vector.load %arg7[%c0_56, %c0_57, %c0_58] : memref<1x4x1xf32, #tpu.memory_space<vmem>>, vector<1x4x1xf32>
      tpu.vector_store %arg7[%c0_56, %c0_57, %c0_58], %83 {strides = array<i32>} : memref<1x4x1xf32, #tpu.memory_space<vmem>>, vector<1x4x1xf32>,
    } else {
    }
    %c0 = arith.constant 0 : index
    %c0_1 = arith.constant 0 : index
    %c0_2 = arith.constant 0 : index
    %c0_3 = arith.constant 0 : index
    %3 = vector.load %arg2[%c0, %c0_1, %c0_2, %c0_3] : memref<1x4x2x128xf32, #tpu.memory_space<vmem>>, vector<1x4x2x128xf32>
    %4 = vector.shape_cast %3 : vector<1x4x2x128xf32> to vector<4x2x128xf32>
    %c0_4 = arith.constant 0 : index
    %c0_5 = arith.constant 0 : index
    %c0_6 = arith.constant 0 : index
    %c0_7 = arith.constant 0 : index
    %5 = vector.load %arg3[%c0_4, %c0_5, %c0_6, %c0_7] : memref<1x1x2x128xi32, #tpu.memory_space<vmem>>, vector<1x1x2x128xi32>
    %6 = vector.shape_cast %5 : vector<1x1x2x128xi32> to vector<1x2x128xi32>
    %c0_i32_8 = arith.constant 0 : i32
    %7 = vector.broadcast %c0_i32_8 : i32 to vector<1x2x128xi32>
    %8 = arith.cmpi eq, %6, %7 : vector<1x2x128xi32>
    %9 = arith.extui %8 : vector<1x2x128xi1> to vector<1x2x128xi32>
    %10 = arith.sitofp %9 : vector<1x2x128xi32> to vector<1x2x128xf32>
    %c1_i32 = arith.constant 1 : i32
    %11 = vector.broadcast %c1_i32 : i32 to vector<1x2x128xi32>
    %12 = arith.cmpi eq, %6, %11 : vector<1x2x128xi32>
    %13 = arith.extui %12 : vector<1x2x128xi1> to vector<1x2x128xi32>
    %14 = arith.sitofp %13 : vector<1x2x128xi32> to vector<1x2x128xf32>
    %c2_i32 = arith.constant 2 : i32
    %15 = vector.broadcast %c2_i32 : i32 to vector<1x2x128xi32>
    %16 = arith.cmpi eq, %6, %15 : vector<1x2x128xi32>
    %17 = arith.extui %16 : vector<1x2x128xi1> to vector<1x2x128xi32>
    %18 = arith.sitofp %17 : vector<1x2x128xi32> to vector<1x2x128xf32>
    %c3_i32 = arith.constant 3 : i32
    %19 = vector.broadcast %c3_i32 : i32 to vector<1x2x128xi32>
    %20 = arith.cmpi eq, %6, %19 : vector<1x2x128xi32>
    %21 = arith.extui %20 : vector<1x2x128xi1> to vector<1x2x128xi32>
    %22 = arith.sitofp %21 : vector<1x2x128xi32> to vector<1x2x128xf32>
    %23 = tpu.concatenate %10, %14, %18, %22 in 0 : vector<1x2x128xf32>, vector<1x2x128xf32>, vector<1x2x128xf32>, vector<1x2x128xf32> -> vector<4x2x128xf32>
    %cst = arith.constant dense<0xFF800000> : vector<2x128xf32>
    %24 = vector.multi_reduction <maximumf>, %4, %cst [0] : vector<4x2x128xf32> to vector<2x128xf32>
    %25 = vector.shape_cast %24 : vector<2x128xf32> to vector<1x2x128xf32>
    %26 = vector.broadcast %25 : vector<1x2x128xf32> to vector<4x2x128xf32>
    %27 = arith.subf %4, %26 : vector<4x2x128xf32>
    %28 = math.exp %27 : vector<4x2x128xf32>
    %cst_9 = arith.constant dense<0.000000e+00> : vector<2x128xf32>
    %29 = vector.multi_reduction <add>, %28, %cst_9 [0] : vector<4x2x128xf32> to vector<2x128xf32>
    %30 = vector.shape_cast %29 : vector<2x128xf32> to vector<1x2x128xf32>
    %31 = tpu.reciprocal %30 {approx = true} : vector<1x2x128xf32> -> vector<1x2x128xf32>
    %32 = vector.broadcast %31 : vector<1x2x128xf32> to vector<4x2x128xf32>
    %33 = arith.mulf %28, %32 : vector<4x2x128xf32>
    %34 = math.log %30 : vector<1x2x128xf32>
    %35 = vector.broadcast %34 : vector<1x2x128xf32> to vector<4x2x128xf32>
    %36 = arith.subf %27, %35 : vector<4x2x128xf32>
    %c0_10 = arith.constant 0 : index
    %c0_11 = arith.constant 0 : index
    %c0_12 = arith.constant 0 : index
    %37 = vector.load %arg4[%c0_10, %c0_11, %c0_12] : memref<1x4x1xf32, #tpu.memory_space<vmem>>, vector<1x4x1xf32>
    %38 = vector.shape_cast %37 : vector<1x4x1xf32> to vector<4x1xf32>
    %39 = arith.mulf %33, %23 : vector<4x2x128xf32>
    %cst_13 = arith.constant dense<0.000000e+00> : vector<4x2xf32>
    %40 = vector.multi_reduction <add>, %39, %cst_13 [2] : vector<4x2x128xf32> to vector<4x2xf32>
    %cst_14 = arith.constant dense<0.000000e+00> : vector<4xf32>
    %41 = vector.multi_reduction <add>, %40, %cst_14 [1] : vector<4x2xf32> to vector<4xf32>
    %42 = vector.shape_cast %41 : vector<4xf32> to vector<4x1xf32>
    %43 = arith.addf %38, %42 : vector<4x1xf32>
    %c0_15 = arith.constant 0 : index
    %c0_16 = arith.constant 0 : index
    %c0_17 = arith.constant 0 : index
    %44 = vector.load %arg4[%c0_15, %c0_16, %c0_17] : memref<1x4x1xf32, #tpu.memory_space<vmem>>, vector<1x4x1xf32>
    %45 = vector.shape_cast %44 : vector<1x4x1xf32> to vector<4x1xf32>
    %46 = vector.shape_cast %43 : vector<4x1xf32> to vector<1x4x1xf32>
    tpu.vector_store %arg4[%c0_15, %c0_16, %c0_17], %46 {strides = array<i32>} : memref<1x4x1xf32, #tpu.memory_space<vmem>>, vector<1x4x1xf32>,
    %c0_18 = arith.constant 0 : index
    %c0_19 = arith.constant 0 : index
    %c0_20 = arith.constant 0 : index
    %47 = vector.load %arg5[%c0_18, %c0_19, %c0_20] : memref<1x4x1xf32, #tpu.memory_space<vmem>>, vector<1x4x1xf32>
    %48 = vector.shape_cast %47 : vector<1x4x1xf32> to vector<4x1xf32>
    %cst_21 = arith.constant dense<0.000000e+00> : vector<4x2xf32>
    %49 = vector.multi_reduction <add>, %33, %cst_21 [2] : vector<4x2x128xf32> to vector<4x2xf32>
    %cst_22 = arith.constant dense<0.000000e+00> : vector<4xf32>
    %50 = vector.multi_reduction <add>, %49, %cst_22 [1] : vector<4x2xf32> to vector<4xf32>
    %51 = vector.shape_cast %50 : vector<4xf32> to vector<4x1xf32>
    %52 = arith.addf %48, %51 : vector<4x1xf32>
    %c0_23 = arith.constant 0 : index
    %c0_24 = arith.constant 0 : index
    %c0_25 = arith.constant 0 : index
    %53 = vector.load %arg5[%c0_23, %c0_24, %c0_25] : memref<1x4x1xf32, #tpu.memory_space<vmem>>, vector<1x4x1xf32>
    %54 = vector.shape_cast %53 : vector<1x4x1xf32> to vector<4x1xf32>
    %55 = vector.shape_cast %52 : vector<4x1xf32> to vector<1x4x1xf32>
    tpu.vector_store %arg5[%c0_23, %c0_24, %c0_25], %55 {strides = array<i32>} : memref<1x4x1xf32, #tpu.memory_space<vmem>>, vector<1x4x1xf32>,
    %c0_26 = arith.constant 0 : index
    %c0_27 = arith.constant 0 : index
    %c0_28 = arith.constant 0 : index
    %56 = vector.load %arg6[%c0_26, %c0_27, %c0_28] : memref<1x4x1xf32, #tpu.memory_space<vmem>>, vector<1x4x1xf32>
    %57 = vector.shape_cast %56 : vector<1x4x1xf32> to vector<4x1xf32>
    %cst_29 = arith.constant dense<0.000000e+00> : vector<4x2xf32>
    %58 = vector.multi_reduction <add>, %23, %cst_29 [2] : vector<4x2x128xf32> to vector<4x2xf32>
    %cst_30 = arith.constant dense<0.000000e+00> : vector<4xf32>
    %59 = vector.multi_reduction <add>, %58, %cst_30 [1] : vector<4x2xf32> to vector<4xf32>
    %60 = vector.shape_cast %59 : vector<4xf32> to vector<4x1xf32>
    %61 = arith.addf %57, %60 : vector<4x1xf32>
    %c0_31 = arith.constant 0 : index
    %c0_32 = arith.constant 0 : index
    %c0_33 = arith.constant 0 : index
    %62 = vector.load %arg6[%c0_31, %c0_32, %c0_33] : memref<1x4x1xf32, #tpu.memory_space<vmem>>, vector<1x4x1xf32>
    %63 = vector.shape_cast %62 : vector<1x4x1xf32> to vector<4x1xf32>
    %64 = vector.shape_cast %61 : vector<4x1xf32> to vector<1x4x1xf32>
    tpu.vector_store %arg6[%c0_31, %c0_32, %c0_33], %64 {strides = array<i32>} : memref<1x4x1xf32, #tpu.memory_space<vmem>>, vector<1x4x1xf32>,
    %c0_34 = arith.constant 0 : index
    %c0_35 = arith.constant 0 : index
    %c0_36 = arith.constant 0 : index
    %65 = vector.load %arg7[%c0_34, %c0_35, %c0_36] : memref<1x4x1xf32, #tpu.memory_space<vmem>>, vector<1x4x1xf32>
    %66 = vector.shape_cast %65 : vector<1x4x1xf32> to vector<4x1xf32>
    %cst_37 = arith.constant 0.000000e+00 : f32
    %67 = vector.broadcast %cst_37 : f32 to vector<4x2x128xf32>
    %68 = arith.subf %67, %36 : vector<4x2x128xf32>
    %69 = arith.mulf %23, %68 : vector<4x2x128xf32>
    %cst_38 = arith.constant dense<0.000000e+00> : vector<4x2xf32>
    %70 = vector.multi_reduction <add>, %69, %cst_38 [2] : vector<4x2x128xf32> to vector<4x2xf32>
    %cst_39 = arith.constant dense<0.000000e+00> : vector<4xf32>
    %71 = vector.multi_reduction <add>, %70, %cst_39 [1] : vector<4x2xf32> to vector<4xf32>
    %72 = vector.shape_cast %71 : vector<4xf32> to vector<4x1xf32>
    %73 = arith.addf %66, %72 : vector<4x1xf32>
    %c0_40 = arith.constant 0 : index
    %c0_41 = arith.constant 0 : index
    %c0_42 = arith.constant 0 : index
    %74 = vector.load %arg7[%c0_40, %c0_41, %c0_42] : memref<1x4x1xf32, #tpu.memory_space<vmem>>, vector<1x4x1xf32>
    %75 = vector.shape_cast %74 : vector<1x4x1xf32> to vector<4x1xf32>
    %76 = vector.shape_cast %73 : vector<4x1xf32> to vector<1x4x1xf32>
    tpu.vector_store %arg7[%c0_40, %c0_41, %c0_42], %76 {strides = array<i32>} : memref<1x4x1xf32, #tpu.memory_space<vmem>>, vector<1x4x1xf32>,
    return
  }
  func.func @transform_0(%arg0: i32, %arg1: i32) -> (i32, i32, i32, i32) {
    %c0_i32 = arith.constant 0 : i32
    %c0_i32_0 = arith.constant 0 : i32
    %c0_i32_1 = arith.constant 0 : i32
    return %arg0, %c0_i32, %arg1, %c0_i32_0 : i32, i32, i32, i32
  }
  func.func @transform_1(%arg0: i32, %arg1: i32) -> (i32, i32, i32, i32) {
    %c0_i32 = arith.constant 0 : i32
    %c0_i32_0 = arith.constant 0 : i32
    %c0_i32_1 = arith.constant 0 : i32
    return %arg0, %c0_i32, %arg1, %c0_i32_0 : i32, i32, i32, i32
  }
  func.func @transform_2(%arg0: i32, %arg1: i32) -> (i32, i32, i32) {
    %c0_i32 = arith.constant 0 : i32
    %c0_i32_0 = arith.constant 0 : i32
    %c0_i32_1 = arith.constant 0 : i32
    return %arg0, %c0_i32, %c0_i32_0 : i32, i32, i32
  }
  func.func @transform_3(%arg0: i32, %arg1: i32) -> (i32, i32, i32) {
    %c0_i32 = arith.constant 0 : i32
    %c0_i32_0 = arith.constant 0 : i32
    %c0_i32_1 = arith.constant 0 : i32
    return %arg0, %c0_i32, %c0_i32_0 : i32, i32, i32
  }
  func.func @transform_4(%arg0: i32, %arg1: i32) -> (i32, i32, i32) {
    %c0_i32 = arith.constant 0 : i32
    %c0_i32_0 = arith.constant 0 : i32
    %c0_i32_1 = arith.constant 0 : i32
    return %arg0, %c0_i32, %c0_i32_0 : i32, i32, i32
  }
  func.func @transform_5(%arg0: i32, %arg1: i32) -> (i32, i32, i32) {
    %c0_i32 = arith.constant 0 : i32
    %c0_i32_0 = arith.constant 0 : i32
    %c0_i32_1 = arith.constant 0 : i32
    return %arg0, %c0_i32, %c0_i32_0 : i32, i32, i32
  }
}

</mosaic_0001>

<bundles_post_ra>
// kernel: tpu_custom_call.1
= control target key start
LH: loop header
LB: loop body
LE: loop exit
PB: predicated region body
PF: predicated region fallthrough
CT: control target
= control target key end

     0   :  { %11 = vsyncpa [#allocation3], 0  ;;  %s1238_s0 = inlined_call_operand.hbm [shape: f32[2,4,2,128], index: 0, kind: input, shape index: {}]   ;;  %s1239_s1 = inlined_call_operand.hbm [shape: s32[2,1,2,128], index: 1, kind: input, shape index: {}]   ;;  %s1240_s2 = inlined_call_operand.vmem [shape: f32[2,4,1], index: 2, kind: output, shape index: {0}]   ;;  %s1241_s3 = inlined_call_operand.vmem [shape: f32[2,4,1], index: 3, kind: output, shape index: {1}]   ;;  %s1242_s4 = inlined_call_operand.vmem [shape: f32[2,4,1], index: 4, kind: output, shape index: {2}]   ;;  %s1243_s5 = inlined_call_operand.vmem [shape: f32[2,4,1], index: 5, kind: output, shape index: {3}]  }
   0x1   :  { %13 = vsyncpa [#allocation3 + $0x1], 0 }
   0x2   :  { %14 = vsyncpa [#allocation5], 0 }
   0x3   :  { %16 = vsyncpa [#allocation5 + $0x1], 0  ;;  %s1017_s18 = smov 0   ;;  %s1019_s19 = smov 0  }
   0x4   :  { %s1021_s20 = smov 0   ;;  %s1023_s21 = smov 0  }
   0x5   :  { %s1025_s22 = smov 0   ;;  %s1027_s23 = smov 0  }
   0x6 LB: > { %s772_s24 = sadd.s32 4294967295, %s980_s23   ;;  %s34_s25 = sadd.s32 1, %s976_s22  ;;  %s980_s23 = sphi %s1027_s23, %s22_s23   ;;  %s976_s22 = sphi %s1025_s22, %s1252_s22   ;;  %s972_s21 = sphi %s1023_s21, %s1251_s21   ;;  %s968_s20 = sphi %s1021_s20, %s1250_s20   ;;  %s964_s19 = sphi %s1019_s19, %s1249_s19   ;;  %s960_s18 = sphi %s1017_s18, %s1248_s18  }
   0x7   : > { %p36_p0 = scmp.ge.s32.totalorder %s34_s25, 2  ;;  %s43_s26 = sadd.s32 1, %s968_s20 }
   0x8   : > { %p50_p1 = scmp.ne.s32.totalorder %s968_s20, %s964_s19  ;;  %p51_p2 = scmp.eq.s32.totalorder %s980_s23, 0 }
   0x9   : > { %s1254_s25 = smov (%p36_p0, %s34_s25), 0  ;;  %p56_p4 = scmp.ne.s32.totalorder %s964_s19, %s960_s18 }
   0xa   : > { %p1053_p3 = por %p51_p2, %p50_p1  ;;  %s38_s28 = ssub.s32 %s976_s22, %s1254_s25 }
   0xb   : > { %p57_p5 = scmp.eq.s32.totalorder %s772_s24, 0  ;;  %p41_p6 = scmp.eq.s32.totalorder %s38_s28, 0 }
   0xc   : > { %p806_p8 = scmp.lt.s32.totalorder %s980_s23, 2  ;;  %s1069_s6 = sand.u32 1, %s968_s20  }
   0xd   : > { %p1060_p7 = por %p57_p5, %p56_p4  ;;  %s794_s7 = sshll.u32 %s976_s22, 7 }
   0xe   : > { %s1066_s30 = scalar_select %p41_p6, %s968_s20, %s43_s26  }
   0xf   : > { %s776_s8 = sshll.u32 %s1069_s6, 3  ;;  %s223_s11 = scalar_lea.hbm %s1238_s0, %s794_s7 }
  0x10   : > { %s216_s12 = scalar_lea.vmem [#allocation2], %s776_s8  ;;  %p1078_p9 = pnand %p806_p8, %p1053_p3 }
  0x11   : > { %s224_s13 = sshll.u32 %s216_s12, 4  ;;  %s213_s15 = scalar_lea.sflag [#allocation3], %s1069_s6  ;;  %s225_s13 = int_to_ptr.vmem [resolvable:$true] %s224_s13 }
  0x12   : > { %p872_p10 = pneg %p1078_p9  ;;  %s883_s16 = scalar_lea.vmem %s225_s13, 128 }
  0x13   : > { %p884_p11 = scmp.ne.s32.totalorder %s225_s13, %s883_s16  ;;  %s982_s17 = smov [#allocation2]  }
  0x14   : > { %s888_s18 = sshll.u32 %s982_s17, 4  ;;  %s889_s18 = int_to_ptr.vmem [resolvable:$false] %s888_s18 }
  0x15   : > { %p886_p12 = pnand %p884_p11, %p872_p10  ;;  %s890_s24 = scalar_lea.vmem %s889_s18, 256 }
  0x16   : > { %p891_p0 = scmp.lt.s32.totalorder %s225_s13, %s889_s18  ;;  %p892_p1 = scmp.lt.s32.totalorder %s890_s24, %s883_s16 }
  0x17   : > { %p887_p13 = pneg %p886_p12 }
  0x18   : > { %p893_p2 = por %p892_p1, %p891_p0 }
  0x1a   : > { %p894_p3 = pnand %p893_p2, %p887_p13 }
  0x1c   : > { %897 = shalt.err (!%p894_p3)
}
  0x1d   : > { %s983_s26 = smov 32   ;;  %s984_s27 = smov 2  }
  0x1e   : > { %802 = dma.hbm_to_vmem [thread:$0]  (!%p1078_p9), %s223_s11, 128, %s225_s13, %s213_s15, %s983_s26, %s983_s26, %s984_s27  }
  0x1f   : > { %p781_p4 = scmp.ge.s32.totalorder %s980_s23, 1  ;;  %p251_p5 = scmp.lt.s32.totalorder %s980_s23, 3 }
  0x20   : > { %s779_s28 = sshll.u32 %s1069_s6, 1  ;;  %s780_s8 = sshll.u32 %s976_s22, 5 }
  0x21   : > { %p1093_p6 = pnand %p781_p4, %p251_p5  ;;  %s238_s9 = scalar_lea.vmem [#allocation4], %s779_s28 }
  0x22   : > { %s246_s10 = sshll.u32 %s238_s9, 4  ;;  %s244_s17 = scalar_lea.hbm %s1239_s1, %s780_s8  ;;  %s247_s10 = int_to_ptr.vmem [resolvable:$true] %s246_s10 }
  0x23   : > { %s235_s18 = scalar_lea.sflag [#allocation5], %s1069_s6  ;;  %s911_s24 = scalar_lea.vmem %s247_s10, 32 }
  0x24   : > { %p912_p8 = scmp.ne.s32.totalorder %s247_s10, %s911_s24  ;;  %s985_s11 = smov [#allocation4]  }
  0x25   : > { %s916_s13 = sshll.u32 %s985_s11, 4  ;;  %s917_s13 = int_to_ptr.vmem [resolvable:$false] %s916_s13 }
  0x26   : > { %p914_p11 = pnand %p912_p8, %p872_p10  ;;  %s918_s15 = scalar_lea.vmem %s917_s13, 64 }
  0x27   : > { %p919_p13 = scmp.lt.s32.totalorder %s247_s10, %s917_s13  ;;  %p920_p0 = scmp.lt.s32.totalorder %s918_s15, %s911_s24 }
  0x28   : > { %p915_p12 = pneg %p914_p11 }
  0x29   : > { %p921_p1 = por %p920_p0, %p919_p13 }
  0x2b   : > { %p922_p2 = pnand %p921_p1, %p915_p12 }
  0x2d   : > { %925 = shalt.err (!%p922_p2)
}
  0x2e   : > { %805 = dma.hbm_to_vmem [thread:$0]  (!%p1078_p9), %s244_s17, 32, %s247_s10, %s235_s18  }
  0x2f   : > { %255 = sbr.rel (%p1093_p6) target bundleno = 415 (0x19f), region = 28  ;;  %s257_s6 = sand.u32 (!%p1093_p6), 1, %s964_s19  }
  0x30   : > { %s782_s26 = sshll.u32 (!%p1093_p6), %s257_s6, 3  ;;  %s258_s27 = scalar_lea.sflag (!%p1093_p6), [#allocation3], %s257_s6 }
  0x31   : > { %s261_s28 = scalar_lea.vmem (!%p1093_p6), [#allocation2], %s782_s26 }
  0x34   : > { %951 = dma.done.wait (%p1060_p7), %s258_s27, 128  }
  0x35   : > { %953 = vsyncadd (%p1060_p7), %s258_s27, 4294967168  ;;  %s783_s8 = sshll.u32 %s257_s6, 1  ;;  %s267_s9 = scalar_lea.sflag [#allocation5], %s257_s6 }
  0x36   : > { %s270_s12 = scalar_lea.vmem [#allocation4], %s783_s8 }
  0x37   : > { %955 = dma.done.wait (%p1060_p7), %s267_s9, 32  }
  0x38   : > { %957 = vsyncadd (%p1060_p7), %s267_s9, 4294967264  ;;  %vm355_vm0 = vcmask 1041408   ;;  %v1118_v0 = vld [vmem:[%s270_s12] sm:$0x3]  ;;  %v338_v1 = vld [vmem:[%s261_s28] sm:$0x3] }
  0x39   : > { %v339_v2 = vld [vmem:[%s261_s28 + $0x2] sm:$0x3]  ;;  %vm343_vm1 = vcmp.eq.s32.totalorder %v1118_v0, 0  ;;  %vm346_vm2 = vcmp.eq.s32.totalorder %v1118_v0, 1  ;;  %vm349_vm3 = vcmp.eq.s32.totalorder %v1118_v0, 2  ;;  %v356_v4 = vsel %vm355_vm0, %v338_v1, -inf }
  0x3a   : > { %v340_v3 = vld [vmem:[%s261_s28 + $0x4] sm:$0x3]  ;;  %v986_v5 = vmov 0.0   ;;  %v341_v9 = vld [vmem:[%s261_s28 + $0x6] sm:$0x3]  ;;  %v357_v10 = vsel %vm355_vm0, %v339_v2, -inf }
  0x3b   : > { %v1125_v6 = vsel %vm343_vm1, 1.0, %v986_v5  ;;  %v1128_v7 = vsel %vm346_vm2, 1.0, %v986_v5  ;;  %v1131_v8 = vsel %vm349_vm3, 1.0, %v986_v5  ;;  %v358_v13 = vsel %vm355_vm0, %v340_v3, -inf  ;;  %p313_p7 = scmp.lt.s32.totalorder %s972_s21, 1 }
  0x3c   : > { %v489_v11 = vsel %vm355_vm0, %v1125_v6, 0.0  ;;  %v492_v12 = vsel %vm355_vm0, %v1128_v7, 0.0  ;;  %v359_v14 = vsel %vm355_vm0, %v341_v9, -inf  ;;  %v360_v15 = vmax.f32 %v356_v4, %v357_v10 }
  0x3d   : > { %490 = vadd.xlane.f32.xlu0 %v489_v11  ;;  %493 = vadd.xlane.f32.xlu1 %v492_v12  ;;  %v495_v16 = vsel %vm355_vm0, %v1131_v8, 0.0  ;;  %v361_v17 = vmax.f32 %v358_v13, %v359_v14  ;;  %vm352_vm4 = vcmp.eq.s32.totalorder %v1118_v0, 3  ;;  %s1256_s21 = smov (!%p313_p7, %s972_s21), 1  ;;  %vm333_vm5 = vcmask 3072  }
  0x3e   : > { %v791_v55 = vsel %vm352_vm4, 1.0, %v986_v5  ;;  %s1169_s29 = sshll.u32 %s1256_s21, 2  ;;  %vm432_vm6 = vcmask 1041409   ;;  %vm434_vm7 = vcmask 1042434   ;;  %vm436_vm8 = vcmask 1043459  }
  0x3f   : > { %v362_v18 = vmax.f32 %v360_v15, %v361_v17  ;;  %s1175_s10 = scalar_lea.vmem %s1241_s3, %s1169_s29  ;;  %v414_v15 = vlaneseq  ;;  %vm439_vm9 = vcmask 11264   ;;  %s316_s17 = scalar_lea.vmem %s1240_s2, %s1169_s29 }
  0x40   : > { %335 = vst.msk [vmem:[%s1175_s10] sm:$0xf] %vm333_vm5, %v986_v5  ;;  %334 = vst.msk [vmem:[%s316_s17] sm:$0xf] %vm333_vm5, %v986_v5  ;;  %s324_s11 = scalar_lea.vmem %s1242_s4, %s1169_s29  ;;  %s328_s6 = scalar_lea.vmem %s1243_s5, %s1169_s29 }
  0x41   : > { %496 = vadd.xlane.f32.xlu0 %v495_v16  ;;  %v363_v19 = vsub.f32 %v338_v1, %v362_v18  ;;  %v364_v20 = vsub.f32 %v339_v2, %v362_v18  ;;  %v365_v21 = vsub.f32 %v340_v3, %v362_v18  ;;  %v366_v22 = vsub.f32 %v341_v9, %v362_v18 }
  0x42   : > { %v415_v18 = vand.u32 127, %v414_v15  ;;  %336 = vst.msk [vmem:[%s324_s11] sm:$0xf] %vm333_vm5, %v986_v5  ;;  %337 = vst.msk [vmem:[%s328_s6] sm:$0xf] %vm333_vm5, %v986_v5 }
  0x43   : > { %v367_v23 = vmul.f32 1.442695, %v363_v19  ;;  %v369_v24 = vmul.f32 1.442695, %v364_v20  ;;  %v371_v25 = vmul.f32 1.442695, %v365_v21 }
  0x44   : > { %v373_v26 = vmul.f32 1.442695, %v366_v22 }
  0x45   : > { %858 = vpow2.f32 %v367_v23 }
  0x46   : > { %860 = vpow2.f32 %v369_v24 }
  0x47   : > { %862 = vpow2.f32 %v371_v25 }
  0x48   : > { %864 = vpow2.f32 %v373_v26 }
  0x52   : > { %v859_v27 = vpop.eup %858 }
  0x53   : > { %v861_v28 = vpop.eup %860  ;;  %v375_v29 = vsel %vm355_vm0, %v859_v27, 0.0 }
  0x54   : > { %v863_v30 = vpop.eup %862  ;;  %v376_v31 = vsel %vm355_vm0, %v861_v28, 0.0 }
  0x55   : > { %v865_v32 = vpop.eup %864  ;;  %v377_v33 = vadd.f32 %v376_v31, %v375_v29  ;;  %v378_v34 = vsel %vm355_vm0, %v863_v30, 0.0 }
  0x56   : > { %v380_v35 = vsel %vm355_vm0, %v865_v32, 0.0 }
  0x57   : > { %v379_v36 = vadd.f32 %v378_v34, %v377_v33 }
  0x59   : > { %v381_v37 = vadd.f32 %v380_v35, %v379_v36 }
  0x5b   : > { %866 = vrcp.f32 %v381_v37 }
  0x5c   : > { %868 = vlog2.f32 %v381_v37 }
  0x68   : > { %v867_v38 = vpop.eup %866 }
  0x69   : > { %v869_v39 = vpop.eup %868  ;;  %v383_v40 = vmul.f32 %v867_v38, %v859_v27  ;;  %v384_v41 = vmul.f32 %v867_v38, %v861_v28  ;;  %v385_v46 = vmul.f32 %v867_v38, %v863_v30  ;;  %v386_v53 = vmul.f32 %v867_v38, %v865_v32 }
  0x6a   : > { %v388_v42 = vmul.f32 0.6931472, %v869_v39 }
  0x6b   : > { %v447_v43 = vsel %vm355_vm0, %v383_v40, 0.0  ;;  %v394_v44 = vmul.f32 %v1125_v6, %v383_v40  ;;  %v395_v45 = vmul.f32 %v1128_v7, %v384_v41  ;;  %v450_v48 = vsel %vm355_vm0, %v384_v41, 0.0 }
  0x6c   : > { %448 = vadd.xlane.f32.xlu1 %v447_v43  ;;  %v390_v49 = vsub.f32 %v364_v20, %v388_v42  ;;  %v389_v50 = vsub.f32 %v363_v19, %v388_v42  ;;  %v396_v52 = vmul.f32 %v1131_v8, %v385_v46  ;;  %v453_v56 = vsel %vm355_vm0, %v385_v46, 0.0 }
  0x6d   : > { %v398_v47 = vsel %vm355_vm0, %v394_v44, 0.0  ;;  %v401_v51 = vsel %vm355_vm0, %v395_v45, 0.0  ;;  %v391_v59 = vsub.f32 %v365_v21, %v388_v42  ;;  %v397_v61 = vmul.f32 %v791_v55, %v386_v53 }
  0x6e   : > { %399 = vadd.xlane.f32.xlu0 %v398_v47  ;;  %v531_v54 = vsub.f32 0.0, %v389_v50  ;;  %v532_v57 = vsub.f32 0.0, %v390_v49  ;;  %v404_v60 = vsel %vm355_vm0, %v396_v52, 0.0  ;;  %v456_v63 = vsel %vm355_vm0, %v386_v53, 0.0 }
  0x6f   : > { %v533_v1 = vsub.f32 0.0, %v391_v59  ;;  %v392_v2 = vsub.f32 %v366_v22, %v388_v42  ;;  %v407_v3 = vsel %vm355_vm0, %v397_v61, 0.0  ;;  %v417_v19 = vshrl.u32 %v414_v15, 7 }
  0x70   : > { %451 = vadd.xlane.f32.xlu1 %v450_v48  ;;  %v535_v58 = vmul.f32 %v1125_v6, %v531_v54  ;;  %v536_v0 = vmul.f32 %v1128_v7, %v532_v57  ;;  %v498_v7 = vsel %vm355_vm0, %v791_v55, 0.0 }
  0x71   : > { %v537_v6 = vmul.f32 %v1131_v8, %v533_v1  ;;  %v534_v9 = vsub.f32 0.0, %v392_v2  ;;  %v418_v22 = vsub.s32 %v415_v18, %v417_v19  ;;  %v393_v2 = vld [vmem:[%s316_s17] sm:$0xf] }
  0x72   : > { %402 = vadd.xlane.f32.xlu0 %v401_v51  ;;  %v539_v62 = vsel %vm355_vm0, %v535_v58, 0.0  ;;  %v542_v4 = vsel %vm355_vm0, %v536_v0, 0.0  ;;  %v446_v0 = vld [vmem:[%s1175_s10] sm:$0xf] }
  0x73   : > { %v545_v10 = vsel %vm355_vm0, %v537_v6, 0.0  ;;  %v538_v11 = vmul.f32 %v791_v55, %v534_v9  ;;  %v488_v9 = vld [vmem:[%s324_s11] sm:$0xf] }
  0x74   : > { %454 = vadd.xlane.f32.xlu1 %v453_v56 }
  0x75   : > { %v548_v12 = vsel %vm355_vm0, %v538_v11, 0.0  ;;  %v530_v11 = vld [vmem:[%s328_s6] sm:$0xf] }
  0x76   : > { %405 = vadd.xlane.f32.xlu0 %v404_v60 }
  0x78   : > { %457 = vadd.xlane.f32.xlu1 %v456_v63 }
  0x7a   : > { %408 = vadd.xlane.f32.xlu0 %v407_v3 }
  0x7c   : > { %543 = vadd.xlane.f32.xlu1 %v542_v4 }
  0x7e   : > { %540 = vadd.xlane.f32.xlu0 %v539_v62 }
  0x80   : > { %546 = vadd.xlane.f32.xlu1 %v545_v10 }
  0x82   : > { %499 = vadd.xlane.f32.xlu0 %v498_v7 }
  0x84   : > { %549 = vadd.xlane.f32.xlu1 %v548_v12 }
  0xc6   : > { %v491_v8 = vpop.xlane.xlu0 %490  ;;  %v494_v13 = vpop.xlane.xlu1 %493 }
  0xc7   : > { %v508_v42 = vrot.slane %v491_v8, %v418_v22  ;;  %v512_v43 = vrot.slane %v494_v13, %v418_v22 }
  0xc9   : > { %v521_v50 = vsel %vm432_vm6, %v512_v43, %v508_v42 }
  0xca   : > { %v497_v14 = vpop.xlane.xlu0 %496 }
  0xcb   : > { %v516_v48 = vrot.slane %v497_v14, %v418_v22 }
  0xcd   : > { %v522_v57 = vsel %vm434_vm7, %v516_v48, %v521_v50 }
  0xf5   : > { %v449_v16 = vpop.xlane.xlu1 %448 }
  0xf6   : > { %v466_v27 = vrot.slane %v449_v16, %v418_v22 }
  0xf7   : > { %v400_v17 = vpop.xlane.xlu0 %399 }
  0xf8   : > { %v419_v31 = vrot.slane %v400_v17, %v418_v22 }
  0xf9   : > { %v452_v20 = vpop.xlane.xlu1 %451 }
  0xfa   : > { %v470_v24 = vrot.slane %v452_v20, %v418_v22 }
  0xfb   : > { %v403_v21 = vpop.xlane.xlu0 %402 }
  0xfc   : > { %v423_v28 = vrot.slane %v403_v21, %v418_v22  ;;  %v479_v32 = vsel %vm432_vm6, %v470_v24, %v466_v27 }
  0xfd   : > { %v455_v23 = vpop.xlane.xlu1 %454 }
  0xfe   : > { %v474_v25 = vrot.slane %v455_v23, %v418_v22  ;;  %v433_v36 = vsel %vm432_vm6, %v423_v28, %v419_v31 }
  0xff   : > { %v406_v26 = vpop.xlane.xlu0 %405 }
 0x100   : > { %v427_v29 = vrot.slane %v406_v26, %v418_v22  ;;  %v480_v35 = vsel %vm434_vm7, %v474_v25, %v479_v32 }
 0x101   : > { %v458_v30 = vpop.xlane.xlu1 %457 }
 0x102   : > { %v478_v33 = vrot.slane %v458_v30, %v418_v22  ;;  %v435_v41 = vsel %vm434_vm7, %v427_v29, %v433_v36 }
 0x103   : > { %v409_v34 = vpop.xlane.xlu0 %408 }
 0x104   : > { %v431_v37 = vrot.slane %v409_v34, %v418_v22  ;;  %v481_v38 = vsel %vm436_vm8, %v478_v33, %v480_v35 }
 0x105   : > { %v544_v39 = vpop.xlane.xlu1 %543  ;;  %v483_v40 = vsel %vm439_vm9, %v481_v38, 0.0 }
 0x106   : > { %484 = vadd.xlane.f32.xlu1 %v483_v40  ;;  %v437_v44 = vsel %vm436_vm8, %v431_v37, %v435_v41  ;;  %v562_v51 = vrot.slane %v544_v39, %v418_v22 }
 0x107   : > { %v541_v45 = vpop.xlane.xlu0 %540  ;;  %v440_v46 = vsel %vm439_vm9, %v437_v44, 0.0 }
 0x108   : > { %v558_v47 = vrot.slane %v541_v45, %v418_v22  ;;  %441 = vadd.xlane.f32.xlu0 %v440_v46 }
 0x109   : > { %v547_v49 = vpop.xlane.xlu1 %546 }
 0x10a   : > { %v566_v52 = vrot.slane %v547_v49, %v418_v22  ;;  %v571_v54 = vsel %vm432_vm6, %v562_v51, %v558_v47 }
 0x10b   : > { %v500_v53 = vpop.xlane.xlu0 %499 }
 0x10c   : > { %v520_v55 = vrot.slane %v500_v53, %v418_v22  ;;  %v572_v61 = vsel %vm434_vm7, %v566_v52, %v571_v54 }
 0x10d   : > { %v550_v56 = vpop.xlane.xlu1 %549 }
 0x10e   : > { %v570_v58 = vrot.slane %v550_v56, %v418_v22  ;;  %v523_v59 = vsel %vm436_vm8, %v520_v55, %v522_v57 }
 0x10f   : > { %v525_v60 = vsel %vm439_vm9, %v523_v59, 0.0 }
 0x110   : > { %526 = vadd.xlane.f32.xlu0 %v525_v60  ;;  %v573_v62 = vsel %vm436_vm8, %v570_v58, %v572_v61 }
 0x111   : > { %v575_v63 = vsel %vm439_vm9, %v573_v62, 0.0 }
 0x112   : > { %576 = vadd.xlane.f32.xlu1 %v575_v63 }
 0x18f   : > { %v485_v1 = vpop.xlane.xlu1 %484 }
 0x190   : > { %v486_v3 = vadd.f32 %v485_v1, %v446_v0 }
 0x191   : > { %v442_v4 = vpop.xlane.xlu0 %441 }
 0x192   : > { %487 = vst.msk [vmem:[%s1175_s10] sm:$0xf] %vm333_vm5, %v486_v3  ;;  %v443_v6 = vadd.f32 %v442_v4, %v393_v2 }
 0x194   : > { %445 = vst.msk [vmem:[%s316_s17] sm:$0xf] %vm333_vm5, %v443_v6 }
 0x199   : > { %v527_v10 = vpop.xlane.xlu0 %526 }
 0x19a   : > { %v528_v7 = vadd.f32 %v527_v10, %v488_v9 }
 0x19b   : > { %v577_v12 = vpop.xlane.xlu1 %576 }
 0x19c   : > { %529 = vst.msk [vmem:[%s324_s11] sm:$0xf] %vm333_vm5, %v528_v7  ;;  %v578_v8 = vadd.f32 %v577_v12, %v530_v11 }
 0x19e   : > { %579 = vst.msk [vmem:[%s328_s6] sm:$0xf] %vm333_vm5, %v578_v8 }
 0x19f PF: > { %s22_s23 = sadd.s32 1, %s980_s23   ;;  %s1248_s18 = smov %s964_s19 }
 0x1a0   : > { %p19_p9 = scmp.ge.s32.totalorder %s22_s23, 4   ;;  %s1249_s19 = smov %s968_s20 }
 0x1a1   : > { %s1250_s20 = smov %s1066_s30  ;;  %s1251_s21 = smov %s976_s22 }
 0x1a2   : > { %s1252_s22 = smov %s1254_s25  ;;  %21 = sbr.rel (!%p19_p9) target bundleno = 6 (0x6), region = 121 }
 0x1a7   :  { %641 = vsyncpa [#allocation3], 1 }
 0x1a8   :  { %643 = vsyncpa [#allocation3 + $0x1], 1 }
 0x1a9   :  { %644 = vsyncpa [#allocation5], 1 }
 0x1aa   :  { %646 = vsyncpa [#allocation5 + $0x1], 1 }

</bundles_post_ra>
